<compile_context>
chip_gen: v6e
topology: v6e:2x2x1
jax: 0.10.0
libtpu: 0.0.40
codegen_flags: <defaults>
</compile_context>

<pallas_src>
import math

import jax
import jax.numpy as jnp
from jax.experimental import pallas as pl
from jax.experimental.pallas import tpu as pltpu


# -----------------------------------------------------------------------------
# Sinusoidal positional-encoding buffer (deterministic, mirrors the nn.Module).
# -----------------------------------------------------------------------------
def _make_pe(d_model: int, max_len: int, dtype=jnp.float32) -> jnp.ndarray:
    """Returns the pe buffer of shape (1, max_len, d_model) in `dtype`.

    Mirrors the PyTorch __init__ (computed in f32, then cast once -- "cast at
    module init", not per call).  Assumes even d_model like the reference.
    """
    position = jnp.arange(max_len, dtype=jnp.float32)[:, None]          # (max_len, 1)
    div_term = jnp.exp(
        jnp.arange(0, d_model, 2, dtype=jnp.float32) * (-math.log(10000.0) / d_model)
    )                                                                    # (ceil(d/2),)
    angles = position * div_term                                         # (max_len, ceil(d/2))
    pe = jnp.zeros((max_len, d_model), dtype=jnp.float32)
    pe = pe.at[:, 0::2].set(jnp.sin(angles))
    pe = pe.at[:, 1::2].set(jnp.cos(angles[:, : d_model // 2]))
    return pe[None].astype(dtype)                                        # (1, max_len, d_model)


# -----------------------------------------------------------------------------
# Kernel
# -----------------------------------------------------------------------------
def _pos_enc_kernel(x_ref, pe_ref, o_ref):
    # x_ref / o_ref: (Bt, L) tile; pe_ref: (1, L) tile in the same dtype.
    # Add directly in x.dtype (no f32 round-trip) and broadcast over batch.
    o_ref[...] = x_ref[...] + pe_ref[...]


def _pick_tiles(B: int, F: int, itemsize: int,
                vmem_budget_bytes: int = 12 << 20,
                max_block_bytes: int = 4 << 20) -> tuple[int, int]:
    """Pick (batch_tile Bt, flat chunk L) for blocks x/out:(Bt,L), pe:(1,L).

      * L is a lane-dense multiple of 128.
      * Double-buffered footprint 2 * L * itemsize * (2*Bt + 1) <= budget.
      * Per x/out block Bt * L * itemsize <= max_block_bytes (roofline sweet spot).
      * Bt == B whenever it fits (common case); otherwise a multiple of 8.
    """
    max_bt = max(1, (vmem_budget_bytes // (2 * 128 * itemsize) - 1) // 2)
    if B <= max_bt:
        bt = B
    else:
        bt = max(8, min(max_bt, (max_bt // 8) * 8))
    l_from_budget = vmem_budget_bytes // (2 * itemsize * (2 * bt + 1))
    l_from_block = max_block_bytes // max(1, bt * itemsize)
    L = max(128, (min(l_from_budget, l_from_block) // 128) * 128)
    L = min(L, pl.cdiv(F, 128) * 128)        # never bigger than (padded) problem
    return bt, L


# -----------------------------------------------------------------------------
# Wrapper
# -----------------------------------------------------------------------------
def positional_encoding(x: jnp.ndarray, pe: jnp.ndarray, *,
                        chunk: int | None = None,
                        batch_tile: int | None = None,
                        alias_input: bool = False,
                        force_pallas: bool = False) -> jnp.ndarray:
    """x: (B, S, D); pe: (1, max_len, D). Returns x + pe[:, :S] in x.dtype.

    Dropout p=0.0 in the module default -> identity.
    """
    B, S, D = x.shape
    assert pe.ndim == 3 and pe.shape[0] == 1 and pe.shape[2] == D
    max_len = pe.shape[1]
    assert S <= max_len, "sequence length exceeds positional-encoding buffer"

    # pe should already be in x.dtype (built once at init); cast here as a fallback.
    if pe.dtype != x.dtype:
        pe = pe.astype(x.dtype)

    itemsize = jnp.dtype(x.dtype).itemsize

    # Tiny problems: a standalone kernel can't beat an XLA-fused elementwise add.
    if not force_pallas and (B * S * D * itemsize) < (1 << 20):
        return x + pe[:, :S, :]

    # Lane-dense, zero-copy flatten: row-major means pe offsets line up with x.
    F = S * D
    x2 = x.reshape(B, F)
    pe2 = pe.reshape(1, max_len * D)

    bt_auto, l_auto = _pick_tiles(B, F, itemsize)
    bt = batch_tile if batch_tile is not None else bt_auto
    L = chunk if chunk is not None else l_auto
    assert L % 128 == 0, "chunk must be a multiple of 128 (lane-dense)"
    bt = min(bt, B)

    num_chunks = pl.cdiv(F, L)          # last chunk may be ragged (padded read / masked write)
    num_btiles = pl.cdiv(B, bt)

    out2 = pl.pallas_call(
        _pos_enc_kernel,
        out_shape=jax.ShapeDtypeStruct((B, F), x.dtype),
        grid_spec=pltpu.PrefetchScalarGridSpec(
            num_scalar_prefetch=0,
            # chunk axis OUTER, batch INNER: pe block index repeats across the
            # inner loop, so the pe tile stays resident (no re-DMA per batch tile).
            grid=(num_chunks, num_btiles),
            in_specs=[
                pl.BlockSpec((bt, L), lambda c, b: (b, c)),   # x tile
                pl.BlockSpec((1, L), lambda c, b: (0, c)),    # pe tile (full buffer;
                                                              # rows picked by index_map)
            ],
            out_specs=pl.BlockSpec((bt, L), lambda c, b: (b, c)),
        ),
        compiler_params=pltpu.CompilerParams(
            dimension_semantics=("parallel", "parallel"),
            vmem_limit_bytes=32 << 20,      # explicit: fits v5e/v6e/v7x, >= block budget
        ),
        input_output_aliases={0: 0} if alias_input else {},
    )(x2, pe2)

    return out2.reshape(B, S, D)


# -----------------------------------------------------------------------------
# Demo / self-check
# -----------------------------------------------------------------------------
if __name__ == "__main__":
    key = jax.random.PRNGKey(0)

    # --- Case 1: small f32 case consistent with the module (B=2, S=8, D=32) ---
    B, S, D = 2, 8, 32
    MAX_LEN = 64                         # stand-in for max_len=4096 at small scale
    x = jax.random.normal(key, (B, S, D), dtype=jnp.float32)
    pe = _make_pe(D, MAX_LEN, dtype=jnp.float32)

    out = positional_encoding(x, pe, force_pallas=True)
    out = jax.block_until_ready(out)
    ref = x + pe[:, :S, :]
    assert out.shape == (B, S, D)
    assert jnp.allclose(out, ref, atol=1e-6), "mismatch vs reference (f32 case)"

    # --- Case 2: bf16, d_model not a multiple of 128, ragged last chunk ---
    #     S*D = 3840, chunk=512 -> 8 chunks, last one ragged (tests masked writes).
    B2, S2, D2 = 2, 40, 96
    key2 = jax.random.PRNGKey(0)
    x2 = jax.random.normal(key2, (B2, S2, D2), dtype=jnp.bfloat16)
    pe2_f32 = _make_pe(D2, MAX_LEN, dtype=jnp.float32)
    pe2 = pe2_f32.astype(jnp.bfloat16)   # pe carried in the activation dtype

    out2 = positional_encoding(x2, pe2, chunk=512, force_pallas=True)
    out2 = jax.block_until_ready(out2)
    ref2 = (x2 + pe2[:, :S2, :]).astype(jnp.float32)   # same-dtype (bf16) reference add
    assert out2.dtype == jnp.bfloat16
    assert jnp.allclose(out2.astype(jnp.float32), ref2, atol=1e-2), \
        "mismatch vs reference (bf16 ragged case)"

    # TODO(synk): nn.Dropout with p>0 (training-mode RNG masking) is not implemented;
    # the module default p=0.0 makes it an identity.
    print("KERNEL_OK")
</pallas_src>

<mosaic_0001>
module attributes {stable_mosaic.version = 11 : i64} {
  func.func @_pos_enc_kernel(%arg0: i32, %arg1: i32, %arg2: memref<2x256xf32, #tpu.memory_space<vmem>>, %arg3: memref<1x256xf32, #tpu.memory_space<vmem>>, %arg4: memref<2x256xf32, #tpu.memory_space<vmem>>) attributes {dimension_semantics = [#tpu.dimension_semantics<parallel>, #tpu.dimension_semantics<parallel>], iteration_bounds = array<i64: 1, 1>, scalar_prefetch = 0 : i64, scratch_operands = 0 : i64, tpu.core_type = #tpu.core_type<tc>, window_params = [{transform_indices = @transform_0, window_bounds = array<i64: 2, 256>}, {transform_indices = @transform_1, window_bounds = array<i64: 1, 256>}, {transform_indices = @transform_2, window_bounds = array<i64: 2, 256>}]} {
    %c0 = arith.constant 0 : index
    %c0_0 = arith.constant 0 : index
    %0 = vector.load %arg2[%c0, %c0_0] : memref<2x256xf32, #tpu.memory_space<vmem>>, vector<2x256xf32>
    %c0_1 = arith.constant 0 : index
    %c0_2 = arith.constant 0 : index
    %1 = vector.load %arg3[%c0_1, %c0_2] : memref<1x256xf32, #tpu.memory_space<vmem>>, vector<1x256xf32>
    %2 = vector.broadcast %1 : vector<1x256xf32> to vector<2x256xf32>
    %3 = arith.addf %0, %2 : vector<2x256xf32>
    %c0_3 = arith.constant 0 : index
    %c0_4 = arith.constant 0 : index
    %4 = vector.load %arg4[%c0_3, %c0_4] : memref<2x256xf32, #tpu.memory_space<vmem>>, vector<2x256xf32>
    tpu.vector_store %arg4[%c0_3, %c0_4], %3 {strides = array<i32>} : memref<2x256xf32, #tpu.memory_space<vmem>>, vector<2x256xf32>,
    return
  }
  func.func @transform_0(%arg0: i32, %arg1: i32) -> (i32, i32) {
    %c0_i32 = arith.constant 0 : i32
    return %arg1, %arg0 : i32, i32
  }
  func.func @transform_1(%arg0: i32, %arg1: i32) -> (i32, i32) {
    %c0_i32 = arith.constant 0 : i32
    %c0_i32_0 = arith.constant 0 : i32
    return %c0_i32, %arg0 : i32, i32
  }
  func.func @transform_2(%arg0: i32, %arg1: i32) -> (i32, i32) {
    %c0_i32 = arith.constant 0 : i32
    return %arg1, %arg0 : i32, i32
  }
}

</mosaic_0001>

<bundles_post_ra>
// kernel: tpu_custom_call.1
= control target key start
LH: loop header
LB: loop body
LE: loop exit
PB: predicated region body
PF: predicated region fallthrough
CT: control target
= control target key end

     0   :  { %7 = vsyncpa [#allocation3], 0  ;;  %s172_s0 = inlined_call_operand.hbm [shape: f32[2,256], index: 0, kind: input, shape index: {}]   ;;  %s173_s1 = inlined_call_operand.hbm [shape: f32[1,2048], index: 1, kind: input, shape index: {}]   ;;  %s174_s2 = inlined_call_operand.hbm [shape: f32[2,256], index: 2, kind: output, shape index: {}]  }
   0x1   :  { %8 = vsyncpa [#allocation6], 0 }
   0x2   :  { %9 = vsyncpa [#allocation4], 0  ;;  %s144_s9 = smov [#allocation2]   ;;  %s145_s11 = smov [#allocation5]  }
   0x3   :  { %s16_s10 = sshll.u32 %s144_s9, 4  ;;  %s26_s12 = sshll.u32 %s145_s11, 4  ;;  %s17_s10 = int_to_ptr.vmem [resolvable:$true] %s16_s10  ;;  %s27_s12 = int_to_ptr.vmem [resolvable:$true] %s26_s12 }
   0x4   :  { %s86_s13 = scalar_lea.vmem %s17_s10, 64  ;;  %p91_p1 = scmp.lt.s32.totalorder %s17_s10, %s17_s10 }
   0x5   :  { %p87_p0 = scmp.ne.s32.totalorder %s17_s10, %s86_s13  ;;  %p92_p2 = scmp.lt.s32.totalorder %s86_s13, %s86_s13 }
   0x7   :  { %p93_p3 = por %p92_p2, %p91_p1 }
   0x9   :  { %p94_p4 = pnand %p93_p3, %p87_p0 }
   0xb   :  { %97 = shalt.err (!%p94_p4)
}
   0xc   :  { %19 = dma.hbm_to_vmem [thread:$0]  %s172_s0, 64, %s17_s10, [#allocation3]  }
   0xd   :  { %s106_s16 = scalar_lea.vmem %s27_s12, 32  ;;  %p111_p6 = scmp.lt.s32.totalorder %s27_s12, %s27_s12 }
   0xe   :  { %p107_p5 = scmp.ne.s32.totalorder %s27_s12, %s106_s16  ;;  %p112_p7 = scmp.lt.s32.totalorder %s106_s16, %s106_s16 }
  0x10   :  { %p113_p8 = por %p112_p7, %p111_p6 }
  0x12   :  { %p114_p9 = pnand %p113_p8, %p107_p5 }
  0x14   :  { %117 = shalt.err (!%p114_p9)
}
  0x15   :  { %29 = dma.hbm_to_vmem [thread:$0]  %s173_s1, 32, %s27_s12, [#allocation6]  }
  0x16   :  { %138 = dma.done.wait [#allocation3], 64  }
  0x17   :  { %139 = vsyncadd [#allocation3], 4294967232 }
  0x18   :  { %140 = dma.done.wait [#allocation6], 32  }
  0x19   :  { %141 = vsyncadd [#allocation6], 4294967264  ;;  %v39_v0 = vlaneseq  ;;  %v146_v1 = vmov 1983009808   ;;  %v37_v7 = vld [vmem:[#allocation5] sm:$0x3] }
  0x1a   :  { %v49_v2 = vunpack.c.l.s4 %v146_v1  ;;  %v36_v12 = vld [vmem:[#allocation2] sm:$0xf]  ;;  %s147_s0 = smov [#allocation7]  }
  0x1b   :  { %v40_v3 = vshrl.u32 %v39_v0, 7  ;;  %s64_s19 = sshll.u32 %s147_s0, 4  ;;  %s65_s19 = int_to_ptr.vmem [resolvable:$true] %s64_s19 }
  0x1c   :  { %v50_v6 = vunpack.c.0.s8 %v49_v2  ;;  %s118_s1 = scalar_lea.vmem %s65_s19, 64  ;;  %p123_p11 = scmp.lt.s32.totalorder %s65_s19, %s65_s19 }
  0x1d   :  { %v41_v4 = vsub.s32 0, %v40_v3  ;;  %v45_v5 = vsub.s32 1, %v40_v3  ;;  %p119_p10 = scmp.ne.s32.totalorder %s65_s19, %s118_s1  ;;  %p124_p12 = scmp.lt.s32.totalorder %s118_s1, %s118_s1 }
  0x1e   :  { %v53_v10 = vsub.s32 %v50_v6, %v40_v3 }
  0x1f   :  { %v42_v8 = vrot.slane %v37_v7, %v41_v4  ;;  %v46_v9 = vrot.slane %v37_v7, %v45_v5  ;;  %p125_p13 = por %p124_p12, %p123_p11 }
  0x21   :  { %v47_v11 = vcombine.low %v42_v8, %v46_v9  ;;  %p126_p0 = pnand %p125_p13, %p119_p10 }
  0x23   :  { %v54_v13 = vrot.slane %v47_v11, %v53_v10 }
  0x25   :  { %v56_v14 = vadd.f32 %v54_v13, %v36_v12 }
  0x27   :  { %57 = vst [vmem:[#allocation7] sm:$0xf] %v56_v14 }
  0x28   :  { %129 = shalt.err (!%p126_p0)
}
  0x29   :  { %67 = dma.vmem_to_hbm [thread:$0]  %s65_s19, 64, %s174_s2, [#allocation4]  }
  0x2a   :  { %142 = dma.done.wait [#allocation4], 64  }
  0x2b   :  { %143 = vsyncadd [#allocation4], 4294967232 }
  0x2c   :  { %71 = vsyncpa [#allocation3], 1 }
  0x2d   :  { %72 = vsyncpa [#allocation6], 1 }
  0x2e   :  { %73 = vsyncpa [#allocation4], 1 }

</bundles_post_ra>
